<compile_context>
chip_gen: v5e
topology: v5e:2x2
jax: 0.10.0
libtpu: 0.0.40
codegen_flags: <defaults>
</compile_context>

<pallas_src>
import functools

import jax
import jax.numpy as jnp
from jax import lax
from jax.experimental import pallas as pl
from jax.experimental.pallas import tpu as pltpu

EPS = 1e-5          # torch LayerNorm default eps
NEG_SLOPE = 0.01    # torch.nn.LeakyReLU default
LANE = 128          # TPU lane width: final output is stored lane-dense


# ----------------------------------------------------------------------------
# Fused Pallas kernel
# ----------------------------------------------------------------------------
def _mxu_dot(a, b):
    """MXU matmul with bf16 operands and f32 accumulation (fast path on all gens)."""
    return jnp.dot(a.astype(jnp.bfloat16), b.astype(jnp.bfloat16),
                   preferred_element_type=jnp.float32)


def _gcn_ln_lrelu(a, x, w, b, g, beta):
    """LeakyReLU(LayerNorm((A @ X) @ W + b)) — aggregate-then-transform ordering."""
    ax = _mxu_dot(a, x)                      # N^2 * Cin  (<= N^2 * Cout)
    h = _mxu_dot(ax, w) + b
    mean = jnp.mean(h, axis=-1, keepdims=True)
    var = jnp.mean((h - mean) ** 2, axis=-1, keepdims=True)
    hn = (h - mean) * lax.rsqrt(var + EPS) * g + beta
    return jnp.where(hn > 0, hn, NEG_SLOPE * hn)


def _league_gnn_kernel(a_team_ref, x_ref,
                       w1_ref, b1_ref, g1_ref, be1_ref,
                       w2_ref, b2_ref, g2_ref, be2_ref,
                       pool_ref, a_league_ref,
                       lw_ref, lb_ref, lg_ref, lbe_ref,
                       fcw_ref, fcb_ref,
                       o_ref):
    """Whole LeagueGNN forward; intermediates live in vregs/VMEM, single HBM write."""
    a_team = a_team_ref[...]

    # --- TeamGNN ---
    h = _gcn_ln_lrelu(a_team, x_ref[...], w1_ref[...], b1_ref[...],
                      g1_ref[...], be1_ref[...])
    h = _gcn_ln_lrelu(a_team, h, w2_ref[...], b2_ref[...],
                      g2_ref[...], be2_ref[...])
    # dropout (eval) = identity; global_mean_pool as matmul with precomputed P [T, N].
    team_emb = _mxu_dot(pool_ref[...], h)                                  # [T, H]

    # --- LeagueGNN head ---
    hr = _gcn_ln_lrelu(a_league_ref[...], team_emb, lw_ref[...], lb_ref[...],
                       lg_ref[...], lbe_ref[...]) + team_emb               # residual
    # fc(hidden -> 1) as VPU multiply + lane reduce (avoids a width-1 MXU pass);
    # broadcast the score across all 128 lanes so the store is unmasked / lane-dense.
    score = jnp.sum(hr * fcw_ref[...], axis=-1, keepdims=True) + fcb_ref[...]
    o_ref[...] = jnp.broadcast_to(score, o_ref.shape)


def _vmem_specs(n):
    return [pl.BlockSpec(memory_space=pltpu.MemorySpace.VMEM) for _ in range(n)]


def league_gnn_pallas(a_team, x, params, pool_mat, a_league):
    t = pool_mat.shape[0]
    out = pl.pallas_call(
        _league_gnn_kernel,
        out_shape=jax.ShapeDtypeStruct((t, LANE), jnp.float32),
        in_specs=_vmem_specs(18),
        out_specs=pl.BlockSpec(memory_space=pltpu.MemorySpace.VMEM),
    )(a_team, x,
      params["conv1_w"], params["conv1_b"], params["ln1_g"], params["ln1_b"],
      params["conv2_w"], params["conv2_b"], params["ln2_g"], params["ln2_b"],
      pool_mat, a_league,
      params["lconv1_w"], params["lconv1_b"], params["lln1_g"], params["lln1_b"],
      params["fc_w_row"], params["fc_b"])
    return out[:, 0]                                      # [T]


# ----------------------------------------------------------------------------
# JAX glue: GCN normalization, pooling matrix, parameter init, full forward
# ----------------------------------------------------------------------------
def gcn_norm_dense(edge_index, num_nodes):
    """Dense D^{-1/2}(A+I)D^{-1/2} matching PyG gcn_norm (flow source->target)."""
    src, dst = edge_index[0], edge_index[1]
    loops = jnp.arange(num_nodes, dtype=src.dtype)
    src = jnp.concatenate([src, loops])
    dst = jnp.concatenate([dst, loops])
    deg = jnp.zeros((num_nodes,), jnp.float32).at[dst].add(1.0)
    dinv = jnp.where(deg > 0, 1.0 / jnp.sqrt(deg), 0.0)
    vals = dinv[src] * dinv[dst]
    a_hat = jnp.zeros((num_nodes, num_nodes), jnp.float32).at[dst, src].add(vals)
    return a_hat


def pool_matrix(batch, num_graphs):
    onehot = (batch[None, :] == jnp.arange(num_graphs)[:, None]).astype(jnp.float32)
    counts = jnp.maximum(onehot.sum(axis=1, keepdims=True), 1.0)
    return onehot / counts


def init_params(key, in_channels, hidden):
    ks = jax.random.split(key, 8)

    def glorot(k, shape):
        fan_in, fan_out = shape
        limit = jnp.sqrt(6.0 / (fan_in + fan_out))
        return jax.random.uniform(k, shape, jnp.float32, -limit, limit)

    fc_w = glorot(ks[3], (hidden, 1))                     # torch xavier_uniform
    p = {
        # TeamGNN
        "conv1_w": glorot(ks[0], (in_channels, hidden)),
        "conv1_b": jnp.zeros((1, hidden), jnp.float32),
        "ln1_g": jnp.ones((1, hidden), jnp.float32),
        "ln1_b": jnp.zeros((1, hidden), jnp.float32),
        "conv2_w": glorot(ks[1], (hidden, hidden)),
        "conv2_b": jnp.zeros((1, hidden), jnp.float32),
        "ln2_g": jnp.ones((1, hidden), jnp.float32),
        "ln2_b": jnp.zeros((1, hidden), jnp.float32),
        # LeagueGNN
        "lconv1_w": glorot(ks[2], (hidden, hidden)),
        "lconv1_b": jnp.zeros((1, hidden), jnp.float32),
        "lln1_g": jnp.ones((1, hidden), jnp.float32),
        "lln1_b": jnp.zeros((1, hidden), jnp.float32),
        # fc stored row-major (1, hidden) so the kernel can do a VPU reduce
        "fc_w_row": fc_w.T,
        "fc_b": jax.random.uniform(ks[4], (1, 1), jnp.float32,
                                   -1.0 / jnp.sqrt(hidden), 1.0 / jnp.sqrt(hidden)),
    }
    return p


@functools.partial(jax.jit, static_argnames=("num_graphs",))
def league_gnn_forward(params, x, edge_index, batch, num_graphs):
    num_nodes = x.shape[0]
    a_team = gcn_norm_dense(edge_index, num_nodes)        # block-diagonal by construction
    pool_mat = pool_matrix(batch, num_graphs)
    ii, jj = jnp.triu_indices(num_graphs, k=1)            # torch.combinations(..., r=2).t()
    league_edge_index = jnp.stack([ii, jj], axis=0)
    a_league = gcn_norm_dense(league_edge_index, num_graphs)
    return league_gnn_pallas(a_team, x, params, pool_mat, a_league)   # [T]


def build_team_edges(num_teams, team_size):
    """All directed intra-team pairs (i != j) for every team."""
    srcs, dsts = [], []
    for t in range(num_teams):
        base = t * team_size
        for i in range(team_size):
            for j in range(team_size):
                if i != j:
                    srcs.append(base + i)
                    dsts.append(base + j)
    edge_index = jnp.array([srcs, dsts], dtype=jnp.int32)
    batch = jnp.repeat(jnp.arange(num_teams, dtype=jnp.int32), team_size)
    return edge_index, batch


if __name__ == "__main__":
    IN_CHANNELS = 16
    HIDDEN = 32
    NUM_TEAMS = 4
    TEAM_SIZE = 5        # nodes (players) per team graph
    NUM_NODES = NUM_TEAMS * TEAM_SIZE

    key = jax.random.PRNGKey(0)
    k_x, k_p = jax.random.split(key)

    x = jax.random.normal(k_x, (NUM_NODES, IN_CHANNELS), jnp.float32)
    edge_index, batch = build_team_edges(NUM_TEAMS, TEAM_SIZE)
    params = init_params(k_p, IN_CHANNELS, HIDDEN)

    preds = league_gnn_forward(params, x, edge_index, batch, NUM_TEAMS)
    preds = jax.block_until_ready(preds)

    assert preds.shape == (NUM_TEAMS,)
    assert jnp.all(jnp.isfinite(preds))
    print("KERNEL_OK")
</pallas_src>

<mosaic_0001>
module attributes {stable_mosaic.version = 11 : i64} {
  func.func @_league_gnn_kernel(%arg0: memref<20x20xf32, #tpu.memory_space<vmem>>, %arg1: memref<20x16xf32, #tpu.memory_space<vmem>>, %arg2: memref<16x32xf32, #tpu.memory_space<vmem>>, %arg3: memref<1x32xf32, #tpu.memory_space<vmem>>, %arg4: memref<1x32xf32, #tpu.memory_space<vmem>>, %arg5: memref<1x32xf32, #tpu.memory_space<vmem>>, %arg6: memref<32x32xf32, #tpu.memory_space<vmem>>, %arg7: memref<1x32xf32, #tpu.memory_space<vmem>>, %arg8: memref<1x32xf32, #tpu.memory_space<vmem>>, %arg9: memref<1x32xf32, #tpu.memory_space<vmem>>, %arg10: memref<4x20xf32, #tpu.memory_space<vmem>>, %arg11: memref<4x4xf32, #tpu.memory_space<vmem>>, %arg12: memref<32x32xf32, #tpu.memory_space<vmem>>, %arg13: memref<1x32xf32, #tpu.memory_space<vmem>>, %arg14: memref<1x32xf32, #tpu.memory_space<vmem>>, %arg15: memref<1x32xf32, #tpu.memory_space<vmem>>, %arg16: memref<1x32xf32, #tpu.memory_space<vmem>>, %arg17: memref<1x1xf32, #tpu.memory_space<vmem>>, %arg18: memref<4x128xf32, #tpu.memory_space<vmem>>) attributes {dimension_semantics = [], scalar_prefetch = 0 : i64, scratch_operands = 0 : i64, tpu.core_type = #tpu.core_type<tc>} {
    %c0 = arith.constant 0 : index
    %c0_0 = arith.constant 0 : index
    %0 = vector.load %arg0[%c0, %c0_0] : memref<20x20xf32, #tpu.memory_space<vmem>>, vector<20x20xf32>
    %c0_1 = arith.constant 0 : index
    %c0_2 = arith.constant 0 : index
    %1 = vector.load %arg1[%c0_1, %c0_2] : memref<20x16xf32, #tpu.memory_space<vmem>>, vector<20x16xf32>
    %c0_3 = arith.constant 0 : index
    %c0_4 = arith.constant 0 : index
    %2 = vector.load %arg2[%c0_3, %c0_4] : memref<16x32xf32, #tpu.memory_space<vmem>>, vector<16x32xf32>
    %c0_5 = arith.constant 0 : index
    %c0_6 = arith.constant 0 : index
    %3 = vector.load %arg3[%c0_5, %c0_6] : memref<1x32xf32, #tpu.memory_space<vmem>>, vector<1x32xf32>
    %c0_7 = arith.constant 0 : index
    %c0_8 = arith.constant 0 : index
    %4 = vector.load %arg4[%c0_7, %c0_8] : memref<1x32xf32, #tpu.memory_space<vmem>>, vector<1x32xf32>
    %c0_9 = arith.constant 0 : index
    %c0_10 = arith.constant 0 : index
    %5 = vector.load %arg5[%c0_9, %c0_10] : memref<1x32xf32, #tpu.memory_space<vmem>>, vector<1x32xf32>
    %6 = arith.truncf %0 : vector<20x20xf32> to vector<20x20xbf16>
    %7 = arith.truncf %1 : vector<20x16xf32> to vector<20x16xbf16>
    %cst = arith.constant dense<0.000000e+00> : vector<20x16xf32>
    %8 = tpu.matmul %6, %7, %cst {dimension_numbers = #tpu.dot_dimension_numbers<[1], [0], [0], [1], [0, 0, 1, 1], [], []>} : vector<20x20xbf16>, vector<20x16xbf16>, vector<20x16xf32> -> vector<20x16xf32>
    %9 = arith.truncf %8 : vector<20x16xf32> to vector<20x16xbf16>
    %10 = arith.truncf %2 : vector<16x32xf32> to vector<16x32xbf16>
    %cst_11 = arith.constant dense<0.000000e+00> : vector<20x32xf32>
    %11 = tpu.matmul %9, %10, %cst_11 {dimension_numbers = #tpu.dot_dimension_numbers<[1], [0], [0], [1], [0, 0, 1, 1], [], []>} : vector<20x16xbf16>, vector<16x32xbf16>, vector<20x32xf32> -> vector<20x32xf32>
    %12 = vector.broadcast %3 : vector<1x32xf32> to vector<20x32xf32>
    %13 = arith.addf %11, %12 : vector<20x32xf32>
    %cst_12 = arith.constant dense<0.000000e+00> : vector<20xf32>
    %14 = vector.multi_reduction <add>, %13, %cst_12 [1] : vector<20x32xf32> to vector<20xf32>
    %15 = vector.shape_cast %14 : vector<20xf32> to vector<20x1xf32>
    %cst_13 = arith.constant 3.200000e+01 : f32
    %16 = vector.broadcast %cst_13 : f32 to vector<20x1xf32>
    %17 = arith.divf %15, %16 : vector<20x1xf32>
    %18 = vector.broadcast %17 : vector<20x1xf32> to vector<20x32xf32>
    %19 = arith.subf %13, %18 : vector<20x32xf32>
    %20 = arith.mulf %19, %19 : vector<20x32xf32>
    %cst_14 = arith.constant dense<0.000000e+00> : vector<20xf32>
    %21 = vector.multi_reduction <add>, %20, %cst_14 [1] : vector<20x32xf32> to vector<20xf32>
    %22 = vector.shape_cast %21 : vector<20xf32> to vector<20x1xf32>
    %cst_15 = arith.constant 3.200000e+01 : f32
    %23 = vector.broadcast %cst_15 : f32 to vector<20x1xf32>
    %24 = arith.divf %22, %23 : vector<20x1xf32>
    %25 = vector.broadcast %17 : vector<20x1xf32> to vector<20x32xf32>
    %26 = arith.subf %13, %25 : vector<20x32xf32>
    %cst_16 = arith.constant 9.99999974E-6 : f32
    %27 = vector.broadcast %cst_16 : f32 to vector<20x1xf32>
    %28 = arith.addf %24, %27 : vector<20x1xf32>
    %29 = math.rsqrt %28 : vector<20x1xf32>
    %30 = vector.broadcast %29 : vector<20x1xf32> to vector<20x32xf32>
    %31 = arith.mulf %26, %30 : vector<20x32xf32>
    %32 = vector.broadcast %4 : vector<1x32xf32> to vector<20x32xf32>
    %33 = arith.mulf %31, %32 : vector<20x32xf32>
    %34 = vector.broadcast %5 : vector<1x32xf32> to vector<20x32xf32>
    %35 = arith.addf %33, %34 : vector<20x32xf32>
    %cst_17 = arith.constant 0.000000e+00 : f32
    %36 = vector.broadcast %cst_17 : f32 to vector<20x32xf32>
    %37 = arith.cmpf ogt, %35, %36 : vector<20x32xf32>
    %cst_18 = arith.constant 0.00999999977 : f32
    %38 = vector.broadcast %cst_18 : f32 to vector<20x32xf32>
    %39 = arith.mulf %38, %35 : vector<20x32xf32>
    %40 = arith.select %37, %35, %39 : vector<20x32xi1>, vector<20x32xf32>
    %c0_19 = arith.constant 0 : index
    %c0_20 = arith.constant 0 : index
    %41 = vector.load %arg6[%c0_19, %c0_20] : memref<32x32xf32, #tpu.memory_space<vmem>>, vector<32x32xf32>
    %c0_21 = arith.constant 0 : index
    %c0_22 = arith.constant 0 : index
    %42 = vector.load %arg7[%c0_21, %c0_22] : memref<1x32xf32, #tpu.memory_space<vmem>>, vector<1x32xf32>
    %c0_23 = arith.constant 0 : index
    %c0_24 = arith.constant 0 : index
    %43 = vector.load %arg8[%c0_23, %c0_24] : memref<1x32xf32, #tpu.memory_space<vmem>>, vector<1x32xf32>
    %c0_25 = arith.constant 0 : index
    %c0_26 = arith.constant 0 : index
    %44 = vector.load %arg9[%c0_25, %c0_26] : memref<1x32xf32, #tpu.memory_space<vmem>>, vector<1x32xf32>
    %45 = arith.truncf %0 : vector<20x20xf32> to vector<20x20xbf16>
    %46 = arith.truncf %40 : vector<20x32xf32> to vector<20x32xbf16>
    %cst_27 = arith.constant dense<0.000000e+00> : vector<20x32xf32>
    %47 = tpu.matmul %45, %46, %cst_27 {dimension_numbers = #tpu.dot_dimension_numbers<[1], [0], [0], [1], [0, 0, 1, 1], [], []>} : vector<20x20xbf16>, vector<20x32xbf16>, vector<20x32xf32> -> vector<20x32xf32>
    %48 = arith.truncf %47 : vector<20x32xf32> to vector<20x32xbf16>
    %49 = arith.truncf %41 : vector<32x32xf32> to vector<32x32xbf16>
    %cst_28 = arith.constant dense<0.000000e+00> : vector<20x32xf32>
    %50 = tpu.matmul %48, %49, %cst_28 {dimension_numbers = #tpu.dot_dimension_numbers<[1], [0], [0], [1], [0, 0, 1, 1], [], []>} : vector<20x32xbf16>, vector<32x32xbf16>, vector<20x32xf32> -> vector<20x32xf32>
    %51 = vector.broadcast %42 : vector<1x32xf32> to vector<20x32xf32>
    %52 = arith.addf %50, %51 : vector<20x32xf32>
    %cst_29 = arith.constant dense<0.000000e+00> : vector<20xf32>
    %53 = vector.multi_reduction <add>, %52, %cst_29 [1] : vector<20x32xf32> to vector<20xf32>
    %54 = vector.shape_cast %53 : vector<20xf32> to vector<20x1xf32>
    %cst_30 = arith.constant 3.200000e+01 : f32
    %55 = vector.broadcast %cst_30 : f32 to vector<20x1xf32>
    %56 = arith.divf %54, %55 : vector<20x1xf32>
    %57 = vector.broadcast %56 : vector<20x1xf32> to vector<20x32xf32>
    %58 = arith.subf %52, %57 : vector<20x32xf32>
    %59 = arith.mulf %58, %58 : vector<20x32xf32>
    %cst_31 = arith.constant dense<0.000000e+00> : vector<20xf32>
    %60 = vector.multi_reduction <add>, %59, %cst_31 [1] : vector<20x32xf32> to vector<20xf32>
    %61 = vector.shape_cast %60 : vector<20xf32> to vector<20x1xf32>
    %cst_32 = arith.constant 3.200000e+01 : f32
    %62 = vector.broadcast %cst_32 : f32 to vector<20x1xf32>
    %63 = arith.divf %61, %62 : vector<20x1xf32>
    %64 = vector.broadcast %56 : vector<20x1xf32> to vector<20x32xf32>
    %65 = arith.subf %52, %64 : vector<20x32xf32>
    %cst_33 = arith.constant 9.99999974E-6 : f32
    %66 = vector.broadcast %cst_33 : f32 to vector<20x1xf32>
    %67 = arith.addf %63, %66 : vector<20x1xf32>
    %68 = math.rsqrt %67 : vector<20x1xf32>
    %69 = vector.broadcast %68 : vector<20x1xf32> to vector<20x32xf32>
    %70 = arith.mulf %65, %69 : vector<20x32xf32>
    %71 = vector.broadcast %43 : vector<1x32xf32> to vector<20x32xf32>
    %72 = arith.mulf %70, %71 : vector<20x32xf32>
    %73 = vector.broadcast %44 : vector<1x32xf32> to vector<20x32xf32>
    %74 = arith.addf %72, %73 : vector<20x32xf32>
    %cst_34 = arith.constant 0.000000e+00 : f32
    %75 = vector.broadcast %cst_34 : f32 to vector<20x32xf32>
    %76 = arith.cmpf ogt, %74, %75 : vector<20x32xf32>
    %cst_35 = arith.constant 0.00999999977 : f32
    %77 = vector.broadcast %cst_35 : f32 to vector<20x32xf32>
    %78 = arith.mulf %77, %74 : vector<20x32xf32>
    %79 = arith.select %76, %74, %78 : vector<20x32xi1>, vector<20x32xf32>
    %c0_36 = arith.constant 0 : index
    %c0_37 = arith.constant 0 : index
    %80 = vector.load %arg10[%c0_36, %c0_37] : memref<4x20xf32, #tpu.memory_space<vmem>>, vector<4x20xf32>
    %81 = arith.truncf %80 : vector<4x20xf32> to vector<4x20xbf16>
    %82 = arith.truncf %79 : vector<20x32xf32> to vector<20x32xbf16>
    %cst_38 = arith.constant dense<0.000000e+00> : vector<4x32xf32>
    %83 = tpu.matmul %81, %82, %cst_38 {dimension_numbers = #tpu.dot_dimension_numbers<[1], [0], [0], [1], [0, 0, 1, 1], [], []>} : vector<4x20xbf16>, vector<20x32xbf16>, vector<4x32xf32> -> vector<4x32xf32>
    %c0_39 = arith.constant 0 : index
    %c0_40 = arith.constant 0 : index
    %84 = vector.load %arg11[%c0_39, %c0_40] : memref<4x4xf32, #tpu.memory_space<vmem>>, vector<4x4xf32>
    %c0_41 = arith.constant 0 : index
    %c0_42 = arith.constant 0 : index
    %85 = vector.load %arg12[%c0_41, %c0_42] : memref<32x32xf32, #tpu.memory_space<vmem>>, vector<32x32xf32>
    %c0_43 = arith.constant 0 : index
    %c0_44 = arith.constant 0 : index
    %86 = vector.load %arg13[%c0_43, %c0_44] : memref<1x32xf32, #tpu.memory_space<vmem>>, vector<1x32xf32>
    %c0_45 = arith.constant 0 : index
    %c0_46 = arith.constant 0 : index
    %87 = vector.load %arg14[%c0_45, %c0_46] : memref<1x32xf32, #tpu.memory_space<vmem>>, vector<1x32xf32>
    %c0_47 = arith.constant 0 : index
    %c0_48 = arith.constant 0 : index
    %88 = vector.load %arg15[%c0_47, %c0_48] : memref<1x32xf32, #tpu.memory_space<vmem>>, vector<1x32xf32>
    %89 = arith.truncf %84 : vector<4x4xf32> to vector<4x4xbf16>
    %90 = arith.truncf %83 : vector<4x32xf32> to vector<4x32xbf16>
    %cst_49 = arith.constant dense<0.000000e+00> : vector<4x32xf32>
    %91 = tpu.matmul %89, %90, %cst_49 {dimension_numbers = #tpu.dot_dimension_numbers<[1], [0], [0], [1], [0, 0, 1, 1], [], []>} : vector<4x4xbf16>, vector<4x32xbf16>, vector<4x32xf32> -> vector<4x32xf32>
    %92 = arith.truncf %91 : vector<4x32xf32> to vector<4x32xbf16>
    %93 = arith.truncf %85 : vector<32x32xf32> to vector<32x32xbf16>
    %cst_50 = arith.constant dense<0.000000e+00> : vector<4x32xf32>
    %94 = tpu.matmul %92, %93, %cst_50 {dimension_numbers = #tpu.dot_dimension_numbers<[1], [0], [0], [1], [0, 0, 1, 1], [], []>} : vector<4x32xbf16>, vector<32x32xbf16>, vector<4x32xf32> -> vector<4x32xf32>
    %95 = vector.broadcast %86 : vector<1x32xf32> to vector<4x32xf32>
    %96 = arith.addf %94, %95 : vector<4x32xf32>
    %cst_51 = arith.constant dense<0.000000e+00> : vector<4xf32>
    %97 = vector.multi_reduction <add>, %96, %cst_51 [1] : vector<4x32xf32> to vector<4xf32>
    %98 = vector.shape_cast %97 : vector<4xf32> to vector<4x1xf32>
    %cst_52 = arith.constant 3.200000e+01 : f32
    %99 = vector.broadcast %cst_52 : f32 to vector<4x1xf32>
    %100 = arith.divf %98, %99 : vector<4x1xf32>
    %101 = vector.broadcast %100 : vector<4x1xf32> to vector<4x32xf32>
    %102 = arith.subf %96, %101 : vector<4x32xf32>
    %103 = arith.mulf %102, %102 : vector<4x32xf32>
    %cst_53 = arith.constant dense<0.000000e+00> : vector<4xf32>
    %104 = vector.multi_reduction <add>, %103, %cst_53 [1] : vector<4x32xf32> to vector<4xf32>
    %105 = vector.shape_cast %104 : vector<4xf32> to vector<4x1xf32>
    %cst_54 = arith.constant 3.200000e+01 : f32
    %106 = vector.broadcast %cst_54 : f32 to vector<4x1xf32>
    %107 = arith.divf %105, %106 : vector<4x1xf32>
    %108 = vector.broadcast %100 : vector<4x1xf32> to vector<4x32xf32>
    %109 = arith.subf %96, %108 : vector<4x32xf32>
    %cst_55 = arith.constant 9.99999974E-6 : f32
    %110 = vector.broadcast %cst_55 : f32 to vector<4x1xf32>
    %111 = arith.addf %107, %110 : vector<4x1xf32>
    %112 = math.rsqrt %111 : vector<4x1xf32>
    %113 = vector.broadcast %112 : vector<4x1xf32> to vector<4x32xf32>
    %114 = arith.mulf %109, %113 : vector<4x32xf32>
    %115 = vector.broadcast %87 : vector<1x32xf32> to vector<4x32xf32>
    %116 = arith.mulf %114, %115 : vector<4x32xf32>
    %117 = vector.broadcast %88 : vector<1x32xf32> to vector<4x32xf32>
    %118 = arith.addf %116, %117 : vector<4x32xf32>
    %cst_56 = arith.constant 0.000000e+00 : f32
    %119 = vector.broadcast %cst_56 : f32 to vector<4x32xf32>
    %120 = arith.cmpf ogt, %118, %119 : vector<4x32xf32>
    %cst_57 = arith.constant 0.00999999977 : f32
    %121 = vector.broadcast %cst_57 : f32 to vector<4x32xf32>
    %122 = arith.mulf %121, %118 : vector<4x32xf32>
    %123 = arith.select %120, %118, %122 : vector<4x32xi1>, vector<4x32xf32>
    %124 = arith.addf %123, %83 : vector<4x32xf32>
    %c0_58 = arith.constant 0 : index
    %c0_59 = arith.constant 0 : index
    %125 = vector.load %arg16[%c0_58, %c0_59] : memref<1x32xf32, #tpu.memory_space<vmem>>, vector<1x32xf32>
    %126 = vector.broadcast %125 : vector<1x32xf32> to vector<4x32xf32>
    %127 = arith.mulf %124, %126 : vector<4x32xf32>
    %cst_60 = arith.constant dense<0.000000e+00> : vector<4xf32>
    %128 = vector.multi_reduction <add>, %127, %cst_60 [1] : vector<4x32xf32> to vector<4xf32>
    %129 = vector.shape_cast %128 : vector<4xf32> to vector<4x1xf32>
    %c0_61 = arith.constant 0 : index
    %c0_62 = arith.constant 0 : index
    %130 = vector.load %arg17[%c0_61, %c0_62] : memref<1x1xf32, #tpu.memory_space<vmem>>, vector<1x1xf32>
    %131 = vector.broadcast %130 : vector<1x1xf32> to vector<4x1xf32>
    %132 = arith.addf %129, %131 : vector<4x1xf32>
    %133 = vector.shape_cast %132 : vector<4x1xf32> to vector<4x1xf32>
    %134 = vector.broadcast %133 : vector<4x1xf32> to vector<4x128xf32>
    %c0_63 = arith.constant 0 : index
    %c0_64 = arith.constant 0 : index
    %135 = vector.load %arg18[%c0_63, %c0_64] : memref<4x128xf32, #tpu.memory_space<vmem>>, vector<4x128xf32>
    tpu.vector_store %arg18[%c0_63, %c0_64], %134 {strides = array<i32>} : memref<4x128xf32, #tpu.memory_space<vmem>>, vector<4x128xf32>,
    return
  }
}

</mosaic_0001>

<bundles_post_ra>
// kernel: mul.3
= control target key start
LH: loop header
LB: loop body
LE: loop exit
PB: predicated region body
PF: predicated region fallthrough
CT: control target
= control target key end

     0   :  { %s34_s0 = inlined_call_operand.vmem [shape: f32[10], index: 0, kind: input, shape index: {}]   ;;  %s35_s1 = inlined_call_operand.vmem [shape: f32[10], index: 1, kind: input, shape index: {}]   ;;  %s36_s2 = inlined_call_operand.vmem [shape: f32[10], index: 2, kind: output, shape index: {}]  }
   0x1   :  { %v3_v0 = vld [vmem:[%s34_s0] sm:$0x1] }
   0x2   :  { %v4_v1 = vld [vmem:[%s35_s1] sm:$0x1] }
   0x3   :  { %v7_v2 = vmul.f32 %v4_v1, %v3_v0 }
   0x5   :  { %9 = vst [vmem:[%s36_s2] sm:$0x1] %v7_v2 }

// kernel: league_gnn_forward.1
= control target key start
LH: loop header
LB: loop body
LE: loop exit
PB: predicated region body
PF: predicated region fallthrough
CT: control target
= control target key end

     0   :  { %vm84_vm0 = vcmask 1041408   ;;  %vm77_vm1 = vcmask 162816   ;;  %vm112_vm2 = vcmask 130048   ;;  %vm137_vm3 = vcmask 261120   ;;  %s797_s1 = inlined_call_operand.vmem [shape: f32[20,16], index: 1, kind: input, shape index: {}]   ;;  %s798_s0 = inlined_call_operand.vmem [shape: f32[20,20], index: 0, kind: input, shape index: {}]   ;;  %s799_s3 = inlined_call_operand.vmem [shape: f32[1,32], index: 3, kind: input, shape index: {}]   ;;  %s800_s2 = inlined_call_operand.vmem [shape: f32[16,32], index: 2, kind: input, shape index: {}]   ;;  %s801_s4 = inlined_call_operand.vmem [shape: f32[1,32], index: 4, kind: input, shape index: {}]   ;;  %s802_s5 = inlined_call_operand.vmem [shape: f32[1,32], index: 5, kind: input, shape index: {}]   ;;  %s803_s7 = inlined_call_operand.vmem [shape: f32[1,32], index: 7, kind: input, shape index: {}]   ;;  %s804_s6 = inlined_call_operand.vmem [shape: f32[32,32], index: 6, kind: input, shape index: {}]   ;;  %s805_s8 = inlined_call_operand.vmem [shape: f32[1,32], index: 8, kind: input, shape index: {}]   ;;  %s806_s9 = inlined_call_operand.vmem [shape: f32[1,32], index: 9, kind: input, shape index: {}]   ;;  %s807_s10 = inlined_call_operand.vmem [shape: f32[4,20], index: 10, kind: input, shape index: {}]   ;;  %s808_s12 = inlined_call_operand.vmem [shape: f32[32,32], index: 12, kind: input, shape index: {}]   ;;  %s809_s11 = inlined_call_operand.vmem [shape: f32[4,4], index: 11, kind: input, shape index: {}]   ;;  %s810_s13 = inlined_call_operand.vmem [shape: f32[1,32], index: 13, kind: input, shape index: {}]   ;;  %s811_s14 = inlined_call_operand.vmem [shape: f32[1,32], index: 14, kind: input, shape index: {}]   ;;  %s812_s15 = inlined_call_operand.vmem [shape: f32[1,32], index: 15, kind: input, shape index: {}]   ;;  %s813_s16 = inlined_call_operand.vmem [shape: f32[1,32], index: 16, kind: input, shape index: {}]   ;;  %s814_s17 = inlined_call_operand.<no memory space> [shape: f32[1,1], index: 17, kind: input, shape index: {}]   ;;  %s815_s18 = inlined_call_operand.vmem [shape: f32[4,128], index: 18, kind: output, shape index: {}]  }
   0x1   :  { %818 = sst [smem:[#allocation3_spill]] %s797_s1  ;;  %v68_v11 = vld [vmem:[%s800_s2] sm:$0xff]  ;;  %v69_v12 = vld [vmem:[%s800_s2 + $0x8] sm:$0xff]  ;;  %vm144_vm4 = vcmask 257024   ;;  %v554_v31 = vmov 32.0  }
   0x2   :  { %819 = sst [smem:[#allocation4_spill]] %s798_s0  ;;  %v108_v13 = vpack.c.bf16 %v69_v12, %v68_v11  ;;  %538 = vrcp.f32 %v554_v31  ;;  %v529_v12 = vld [vmem:[%s802_s5] ss:$0 sm:$0xff] }
   0x3   :  { %820 = sst [smem:[#allocation5_spill]] %s799_s3 }
   0x4   :  { %s821_s29 = sld [smem:[#allocation3_spill]]  ;;  %126 = vmatpush.bf16.msra.mxu1 %v108_v13 }
   0x5   :  { %s822_s22 = sld [smem:[#allocation4_spill]] }
   0x6   :  { %s823_s19 = sld [smem:[#allocation5_spill]] }
   0x8   :  { %v539_v32 = vpop.eup %538 }
   0x9   :  { %v149_v33 = vmul.f32 32.0, %v539_v32  ;;  %vm153_vm5 = vweird.f32 %v539_v32 }
   0xa   :  { %v67_v0 = vld [vmem:[%s821_s29 + $0x10] sm:$0xf]  ;;  %v65_v2 = vld [vmem:[%s821_s29] sm:$0xff]  ;;  %v66_v3 = vld [vmem:[%s821_s29 + $0x8] sm:$0xff] }
   0xb   :  { %v76_v1 = vpack.c.bf16 %v67_v0, %v67_v0  ;;  %v75_v5 = vpack.c.bf16 %v66_v3, %v65_v2  ;;  %v62_v6 = vld [vmem:[%s822_s22] sm:$0xff]  ;;  %v63_v7 = vld [vmem:[%s822_s22 + $0x8] sm:$0xff]  ;;  %v64_v9 = vld [vmem:[%s822_s22 + $0x10] sm:$0xf]  ;;  %v150_v34 = vsub.f32 1.0, %v149_v33 }
   0xc   :  { %v667_v8 = vpack.c.bf16 %v63_v7, %v62_v6  ;;  %v674_v10 = vpack.c.bf16 %v64_v9, %v64_v9  ;;  %v527_v21 = vld [vmem:[%s823_s19] ss:$0 sm:$0xff] }
   0xd   :  { %v86_v4 = vsel %vm84_vm0, %v76_v1, 0  ;;  %v151_v35 = vmul.f32 %v539_v32, %v150_v34  ;;  %v528_v6 = vld [vmem:[%s801_s4] ss:$0 sm:$0xff] }
   0xe   :  { %94 = vmatpush.bf16.msra.mxu0 %v86_v4 }
   0xf   :  { %v152_v36 = vadd.f32 %v539_v32, %v151_v35 }
  0x11   :  { %v690_v37 = vsel %vm153_vm5, %v539_v32, %v152_v36 }
  0x12   :  { %95 = vmatpush.bf16.msra.mxu0 %v75_v5 }
  0x15   :  { %513 = vmatmul.msk.bf16.vlgmr.msra.gmra.mxu0 %vm77_vm1, %v667_v8 }
  0x25   :  { %514 = vmatmul.msk.bf16.gmra.mxu0 %vm77_vm1, %v674_v10 }
  0x92   :  { %v97_v14 = vpop.f32.mrf.mxu0 }
  0x9a   :  { %v99_v15 = vpop.f32.mrf.mxu0 }
  0x9b   :  { %v106_v16 = vpack.c.bf16 %v99_v15, %v97_v14 }
  0x9d   :  { %515 = vmatmul.msk.bf16.vlgmr.msra.gmra.mxu1 %vm112_vm2, %v106_v16 }
  0xa2   :  { %v102_v17 = vpop.f32.mrf.mxu0 }
  0xa3   :  { %v107_v18 = vpack.c.bf16 %v102_v17, %v102_v17 }
  0xaa   :  { %v104_v19 = vpop.f32.mrf.mxu0 }
  0xad   :  { %516 = vmatmul.msk.bf16.gmra.mxu1 %vm112_vm2, %v107_v18 }
 0x11a   :  { %v128_v20 = vpop.f32.mrf.mxu1 }
 0x11b   :  { %v129_v28 = vadd.f32 %v527_v21, %v128_v20 }
 0x11d   :  { %v138_v30 = vsel %vm137_vm3, %v129_v28, 0.0 }
 0x122   :  { %v130_v22 = vpop.f32.mrf.mxu1 }
 0x123   :  { %v131_v23 = vadd.f32 %v527_v21, %v130_v22 }
 0x125   :  { %v141_v24 = vsel %vm137_vm3, %v131_v23, 0.0 }
 0x126   :  { %142 = vadd.xlane.f32.xlu1 %v141_v24 }
 0x12a   :  { %v133_v25 = vpop.f32.mrf.mxu1 }
 0x12b   :  { %v134_v26 = vadd.f32 %v527_v21, %v133_v25 }
 0x12d   :  { %v145_v27 = vsel %vm144_vm4, %v134_v26, 0.0 }
 0x12e   :  { %146 = vadd.xlane.f32.xlu0 %v145_v27 }
 0x132   :  { %v135_v29 = vpop.f32.mrf.mxu1 }
 0x136   :  { %139 = vadd.xlane.f32.xlu0 %v138_v30 }
 0x199   :  { %v143_v43 = vpop.xlane.xlu1 %142 }
 0x19a   :  { %v156_v46 = vmul.f32 %v690_v37, %v143_v43  ;;  %v236_v43 = vld [vmem:[%s804_s6 + $0x18] sm:$0xff] }
 0x19c   :  { %v696_v49 = vsub.f32 %v131_v23, %v156_v46 }
 0x19e   :  { %v162_v51 = vmul.f32 %v696_v49, %v696_v49 }
 0x1a0   :  { %v167_v52 = vsel %vm137_vm3, %v162_v51, 0.0 }
 0x1a1   :  { %v147_v38 = vpop.xlane.xlu0 %146 }
 0x1a2   :  { %v157_v39 = vmul.f32 %v690_v37, %v147_v38 }
 0x1a4   :  { %v160_v40 = vsub.f32 %v134_v26, %v157_v39 }
 0x1a6   :  { %v163_v41 = vmul.f32 %v160_v40, %v160_v40 }
 0x1a8   :  { %v170_v42 = vsel %vm144_vm4, %v163_v41, 0.0 }
 0x1a9   :  { %171 = vadd.xlane.f32.xlu1 %v170_v42  ;;  %v140_v44 = vpop.xlane.xlu0 %139  ;;  %v235_v42 = vld [vmem:[%s804_s6 + $0x10] sm:$0xff] }
 0x1aa   :  { %v155_v45 = vmul.f32 %v690_v37, %v140_v44  ;;  %v266_v44 = vpack.c.bf16 %v236_v43, %v235_v42 }
 0x1ac   :  { %v158_v47 = vsub.f32 %v129_v28, %v155_v45  ;;  %282 = vmatpush.bf16.msra.mxu3 %v266_v44  ;;  %v233_v45 = vld [vmem:[%s804_s6] sm:$0xff] }
 0x1ae   :  { %v161_v48 = vmul.f32 %v158_v47, %v158_v47 }
 0x1b0   :  { %v164_v50 = vsel %vm137_vm3, %v161_v48, 0.0 }
 0x1b1   :  { %165 = vadd.xlane.f32.xlu2 %v164_v50 }
 0x1b9   :  { %168 = vadd.xlane.f32.xlu2 %v167_v52  ;;  %v530_v52 = vld [vmem:[%s803_s7] ss:$0 sm:$0xff] }
 0x21c   :  { %v172_v53 = vpop.xlane.xlu1 %171 }
 0x21d   :  { %v175_v54 = vmul.f32 %v172_v53, %v690_v37 }
 0x21f   :  { %v178_v55 = vadd.f32 1e-05, %v175_v54 }
 0x221   :  { %540 = vrsqrt.f32 %v178_v55  ;;  %vm205_vm7 = vweird.f32 %v178_v55 }
 0x224   :  { %v166_v56 = vpop.xlane.xlu2 %165 }
 0x225   :  { %v173_v57 = vmul.f32 %v166_v56, %v690_v37 }
 0x227   :  { %v541_v58 = vpop.eup %540  ;;  %v176_v59 = vadd.f32 1e-05, %v173_v57 }
 0x228   :  { %v200_v60 = vmul.f32 %v541_v58, %v178_v55  ;;  %vm206_vm6 = vweird.f32 %v541_v58 }
 0x229   :  { %542 = vrsqrt.f32 %v176_v59  ;;  %vm207_vm8 = vmor %vm205_vm7, %vm206_vm6  ;;  %vm185_vm10 = vweird.f32 %v176_v59 }
 0x22a   :  { %v201_v61 = vmul.f32 %v541_v58, %v200_v60 }
 0x22c   :  { %v202_v62 = vmul.f32 0.5, %v201_v61  ;;  %v169_v63 = vpop.xlane.xlu2 %168 }
 0x22d   :  { %v174_v0 = vmul.f32 %v169_v63, %v690_v37 }
 0x22e   :  { %v203_v1 = vsub.f32 1.5, %v202_v62 }
 0x22f   :  { %v543_v2 = vpop.eup %542  ;;  %v177_v3 = vadd.f32 1e-05, %v174_v0 }
 0x230   :  { %v204_v4 = vmul.f32 %v541_v58, %v203_v1  ;;  %v180_v5 = vmul.f32 %v543_v2, %v176_v59  ;;  %vm186_vm9 = vweird.f32 %v543_v2 }
 0x231   :  { %544 = vrsqrt.f32 %v177_v3  ;;  %vm187_vm11 = vmor %vm185_vm10, %vm186_vm9  ;;  %vm195_vm14 = vweird.f32 %v177_v3 }
 0x232   :  { %v208_v7 = vsel %vm207_vm8, %v541_v58, %v204_v4  ;;  %v181_v9 = vmul.f32 %v543_v2, %v180_v5 }
 0x233   :  { %v211_v11 = vmul.f32 %v208_v7, %v160_v40 }
 0x234   :  { %v182_v13 = vmul.f32 0.5, %v181_v9 }
 0x235   :  { %v217_v14 = vmul.f32 %v528_v6, %v211_v11 }
 0x236   :  { %v183_v15 = vsub.f32 1.5, %v182_v13 }
 0x237   :  { %v545_v16 = vpop.eup %544  ;;  %v223_v17 = vadd.f32 %v529_v12, %v217_v14 }
 0x238   :  { %v184_v18 = vmul.f32 %v543_v2, %v183_v15  ;;  %v190_v19 = vmul.f32 %v545_v16, %v177_v3  ;;  %vm196_vm13 = vweird.f32 %v545_v16 }
 0x239   :  { %vm226_vm12 = vcmp.gt.f32.partialorder %v223_v17, 0.0  ;;  %v229_v20 = vmul.f32 0.01, %v223_v17  ;;  %vm197_vm15 = vmor %vm195_vm14, %vm196_vm13 }
 0x23a   :  { %v188_v21 = vsel %vm187_vm11, %v543_v2, %v184_v18  ;;  %v191_v22 = vmul.f32 %v545_v16, %v190_v19 }
 0x23b   :  { %v209_v23 = vmul.f32 %v188_v21, %v158_v47  ;;  %v232_v24 = vsel %vm226_vm12, %v223_v17, %v229_v20 }
 0x23c   :  { %v192_v25 = vmul.f32 0.5, %v191_v22  ;;  %v241_v26 = vpack.c.bf16 %v232_v24, %v232_v24 }
 0x23d   :  { %v215_v29 = vmul.f32 %v528_v6, %v209_v23 }
 0x23e   :  { %v193_v27 = vsub.f32 1.5, %v192_v25  ;;  %v243_v28 = vsel %vm84_vm0, %v241_v26, 0 }
 0x23f   :  { %251 = vmatpush.bf16.msra.mxu2 %v243_v28  ;;  %v221_v33 = vadd.f32 %v529_v12, %v215_v29 }
 0x240   :  { %v194_v30 = vmul.f32 %v545_v16, %v193_v27 }
 0x241   :  { %v227_v36 = vmul.f32 0.01, %v221_v33  ;;  %vm224_vm2 = vcmp.gt.f32.partialorder %v221_v33, 0.0 }
 0x242   :  { %v198_v31 = vsel %vm197_vm15, %v545_v16, %v194_v30 }
 0x243   :  { %v210_v32 = vmul.f32 %v198_v31, %v696_v49  ;;  %v230_v39 = vsel %vm224_vm2, %v221_v33, %v227_v36 }
 0x245   :  { %v216_v34 = vmul.f32 %v528_v6, %v210_v32 }
 0x247   :  { %v222_v35 = vadd.f32 %v529_v12, %v216_v34 }
 0x249   :  { %vm225_vm5 = vcmp.gt.f32.partialorder %v222_v35, 0.0  ;;  %v228_v38 = vmul.f32 0.01, %v222_v35 }
 0x24b   :  { %v231_v40 = vsel %vm225_vm5, %v222_v35, %v228_v38 }
 0x24c   :  { %v240_v41 = vpack.c.bf16 %v231_v40, %v230_v39 }
 0x24e   :  { %252 = vmatpush.bf16.msra.mxu2 %v240_v41 }
 0x251   :  { %517 = vmatmul.msk.bf16.vlgmr.msra.gmra.mxu2 %vm77_vm1, %v667_v8  ;;  %v234_v8 = vld [vmem:[%s804_s6 + $0x8] sm:$0xff] }
 0x252   :  { %v265_v46 = vpack.c.bf16 %v234_v8, %v233_v45 }
 0x254   :  { %283 = vmatpush.bf16.msra.mxu3 %v265_v46 }
 0x261   :  { %518 = vmatmul.msk.bf16.gmra.mxu2 %vm77_vm1, %v674_v10 }
 0x2d4   :  { %v254_v10 = vpop.f32.mrf.mxu2 }
 0x2dc   :  { %v256_v47 = vpop.f32.mrf.mxu2 }
 0x2dd   :  { %v263_v48 = vpack.c.bf16 %v256_v47, %v254_v10  ;;  %v531_v10 = vld [vmem:[%s805_s8] ss:$0 sm:$0xff] }
 0x2df   :  { %519 = vmatmul.msk.bf16.vlgmr.msra.gmra.mxu3 %vm137_vm3, %v263_v48 }
 0x2e4   :  { %v259_v49 = vpop.f32.mrf.mxu2 }
 0x2e5   :  { %v264_v50 = vpack.c.bf16 %v259_v49, %v259_v49 }
 0x2ec   :  { %v261_v51 = vpop.f32.mrf.mxu2 }
 0x2ef   :  { %520 = vmatmul.msk.bf16.gmra.mxu3 %vm137_vm3, %v264_v50  ;;  %v532_v50 = vld [vmem:[%s806_s9] ss:$0 sm:$0xff] }
 0x362   :  { %v285_v53 = vpop.f32.mrf.mxu3 }
 0x363   :  { %v286_v54 = vadd.f32 %v530_v52, %v285_v53 }
 0x365   :  { %v294_v55 = vsel %vm137_vm3, %v286_v54, 0.0 }
 0x366   :  { %295 = vadd.xlane.f32.xlu1 %v294_v55 }
 0x36a   :  { %v287_v56 = vpop.f32.mrf.mxu3 }
 0x36b   :  { %v288_v57 = vadd.f32 %v530_v52, %v287_v56 }
 0x36d   :  { %v297_v58 = vsel %vm137_vm3, %v288_v57, 0.0 }
 0x36e   :  { %298 = vadd.xlane.f32.xlu2 %v297_v58 }
 0x372   :  { %v290_v59 = vpop.f32.mrf.mxu3 }
 0x373   :  { %v291_v60 = vadd.f32 %v530_v52, %v290_v59 }
 0x375   :  { %v300_v61 = vsel %vm144_vm4, %v291_v60, 0.0 }
 0x376   :  { %301 = vadd.xlane.f32.xlu0 %v300_v61 }
 0x37a   :  { %v292_v62 = vpop.f32.mrf.mxu3 }
 0x3d9   :  { %v296_v63 = vpop.xlane.xlu1 %295 }
 0x3da   :  { %v303_v0 = vmul.f32 %v296_v63, %v690_v37  ;;  %v381_v63 = vld [vmem:[%s807_s10] sm:$0xf] }
 0x3dc   :  { %v306_v1 = vsub.f32 %v286_v54, %v303_v0 }
 0x3de   :  { %v309_v2 = vmul.f32 %v306_v1, %v306_v1 }
 0x3e0   :  { %v312_v3 = vsel %vm137_vm3, %v309_v2, 0.0  ;;  %v382_v2 = vpack.c.bf16 %v381_v63, %v381_v63 }
 0x3e1   :  { %v299_v4 = vpop.xlane.xlu2 %298  ;;  %313 = vadd.xlane.f32.xlu1 %v312_v3  ;;  %v407_v3 = vld [vmem:[%s808_s12 + $0x10] sm:$0xff] }
 0x3e2   :  { %v304_v5 = vmul.f32 %v299_v4, %v690_v37  ;;  %v408_v4 = vld [vmem:[%s808_s12 + $0x18] sm:$0xff] }
 0x3e4   :  { %v307_v6 = vsub.f32 %v288_v57, %v304_v5  ;;  %v436_v5 = vpack.c.bf16 %v408_v4, %v407_v3 }
 0x3e6   :  { %v310_v7 = vmul.f32 %v307_v6, %v307_v6  ;;  %449 = vmatpush.bf16.msrb.mxu2 %v436_v5 }
 0x3e8   :  { %v315_v9 = vsel %vm137_vm3, %v310_v7, 0.0  ;;  %v404_v7 = vld [vmem:[%s809_s11] sm:$0xf] }
 0x3e9   :  { %316 = vadd.xlane.f32.xlu2 %v315_v9  ;;  %v302_v11 = vpop.xlane.xlu0 %301 }
 0x3ea   :  { %v305_v12 = vmul.f32 %v302_v11, %v690_v37 }
 0x3ec   :  { %v308_v13 = vsub.f32 %v291_v60, %v305_v12  ;;  %v412_v12 = vpack.c.bf16 %v404_v7, %v404_v7 }
 0x3ee   :  { %v311_v14 = vmul.f32 %v308_v13, %v308_v13 }
 0x3f0   :  { %v318_v15 = vsel %vm144_vm4, %v311_v14, 0.0  ;;  %v405_v14 = vld [vmem:[%s808_s12] sm:$0xff] }
 0x3f1   :  { %319 = vadd.xlane.f32.xlu0 %v318_v15  ;;  %v406_v15 = vld [vmem:[%s808_s12 + $0x8] sm:$0xff] }
 0x454   :  { %v314_v16 = vpop.xlane.xlu1 %313 }
 0x455   :  { %v321_v17 = vmul.f32 %v314_v16, %v690_v37  ;;  %v435_v16 = vpack.c.bf16 %v406_v15, %v405_v14 }
 0x457   :  { %v324_v18 = vadd.f32 1e-05, %v321_v17  ;;  %450 = vmatpush.bf16.msrb.mxu2 %v435_v16 }
 0x459   :  { %546 = vrsqrt.f32 %v324_v18  ;;  %vm333_vm10 = vweird.f32 %v324_v18 }
 0x45c   :  { %v317_v19 = vpop.xlane.xlu2 %316 }
 0x45d   :  { %v322_v20 = vmul.f32 %v317_v19, %v690_v37 }
 0x45f   :  { %v547_v21 = vpop.eup %546  ;;  %v325_v22 = vadd.f32 1e-05, %v322_v20  ;;  %v533_v20 = vld [vmem:[%s810_s13] ss:$0 sm:$0xff] }
 0x460   :  { %v328_v23 = vmul.f32 %v547_v21, %v324_v18  ;;  %vm334_vm7 = vweird.f32 %v547_v21 }
 0x461   :  { %548 = vrsqrt.f32 %v325_v22  ;;  %vm343_vm8 = vweird.f32 %v325_v22  ;;  %vm335_vm11 = vmor %vm333_vm10, %vm334_vm7 }
 0x462   :  { %v329_v25 = vmul.f32 %v547_v21, %v328_v23 }
 0x464   :  { %v320_v24 = vpop.xlane.xlu0 %319  ;;  %v330_v30 = vmul.f32 0.5, %v329_v25 }
 0x465   :  { %v323_v26 = vmul.f32 %v320_v24, %v690_v37 }
 0x466   :  { %v331_v33 = vsub.f32 1.5, %v330_v30 }
 0x467   :  { %v549_v27 = vpop.eup %548  ;;  %v326_v28 = vadd.f32 1e-05, %v323_v26 }
 0x468   :  { %v338_v29 = vmul.f32 %v549_v27, %v325_v22  ;;  %vm344_vm6 = vweird.f32 %v549_v27  ;;  %v332_v39 = vmul.f32 %v547_v21, %v331_v33  ;;  %v23_v33 = vstv %s814_s17 }
 0x469   :  { %550 = vrsqrt.f32 %v326_v28  ;;  %vm345_vm9 = vmor %vm343_vm8, %vm344_vm6  ;;  %vm353_vm13 = vweird.f32 %v326_v28  ;;  %24 = vst [vmem:[#allocation2] sm:$0x1] %v23_v33 }
 0x46a   :  { %v339_v31 = vmul.f32 %v549_v27, %v338_v29  ;;  %v336_v43 = vsel %vm335_vm11, %v547_v21, %v332_v39 }
 0x46b   :  { %v357_v8 = vmul.f32 %v336_v43, %v306_v1  ;;  %v535_v43 = vld [vmem:[%s812_s15] ss:$0 sm:$0xff] }
 0x46c   :  { %v340_v32 = vmul.f32 0.5, %v339_v31 }
 0x46d   :  { %v363_v51 = vmul.f32 %v531_v10, %v357_v8 }
 0x46e   :  { %v341_v34 = vsub.f32 1.5, %v340_v32 }
 0x46f   :  { %v551_v35 = vpop.eup %550  ;;  %v369_v55 = vadd.f32 %v532_v50, %v363_v51 }
 0x470   :  { %v342_v36 = vmul.f32 %v549_v27, %v341_v34  ;;  %v348_v38 = vmul.f32 %v551_v35, %v326_v28  ;;  %vm354_vm12 = vweird.f32 %v551_v35  ;;  %v537_v51 = vld [vmem:[#allocation2] ss:$0 sm:$0xff] }
 0x471   :  { %vm355_vm14 = vmor %vm353_vm13, %vm354_vm12  ;;  %v375_v60 = vmul.f32 0.01, %v369_v55  ;;  %vm372_vm5 = vcmp.gt.f32.partialorder %v369_v55, 0.0 }
 0x472   :  { %v349_v40 = vmul.f32 %v551_v35, %v348_v38  ;;  %v346_v41 = vsel %vm345_vm9, %v549_v27, %v342_v36 }
 0x473   :  { %v358_v44 = vmul.f32 %v346_v41, %v307_v6  ;;  %v378_v0 = vsel %vm372_vm5, %v369_v55, %v375_v60  ;;  %v534_v41 = vld [vmem:[%s811_s14] ss:$0 sm:$0xff] }
 0x474   :  { %v350_v42 = vmul.f32 0.5, %v349_v40 }
 0x475   :  { %v364_v48 = vmul.f32 %v531_v10, %v358_v44 }
 0x476   :  { %v351_v45 = vsub.f32 1.5, %v350_v42 }
 0x477   :  { %v370_v53 = vadd.f32 %v532_v50, %v364_v48 }
 0x478   :  { %v352_v46 = vmul.f32 %v551_v35, %v351_v45 }
 0x479   :  { %v376_v57 = vmul.f32 0.01, %v370_v53  ;;  %vm373_vm2 = vcmp.gt.f32.partialorder %v370_v53, 0.0 }
 0x47a   :  { %v356_v47 = vsel %vm355_vm14, %v551_v35, %v352_v46  ;;  %v536_v46 = vld [vmem:[%s813_s16] ss:$0 sm:$0xff] }
 0x47b   :  { %v359_v49 = vmul.f32 %v356_v47, %v308_v13  ;;  %v379_v62 = vsel %vm373_vm2, %v370_v53, %v376_v57 }
 0x47c   :  { %v383_v1 = vpack.c.bf16 %v379_v62, %v378_v0 }
 0x47d   :  { %v365_v52 = vmul.f32 %v531_v10, %v359_v49 }
 0x47f   :  { %v371_v54 = vadd.f32 %v532_v50, %v365_v52  ;;  %v555_v50 = vmov 0  }
 0x480   :  { %526 = vset.pattern.permute.xlu0 %v555_v50 }
 0x481   :  { %vm374_vm15 = vcmp.gt.f32.partialorder %v371_v54, 0.0  ;;  %v377_v56 = vmul.f32 0.01, %v371_v54 }
 0x483   :  { %v380_v58 = vsel %vm374_vm15, %v371_v54, %v377_v56 }
 0x484   :  { %v384_v59 = vpack.c.bf16 %v380_v58, %v380_v58 }
 0x486   :  { %v389_v61 = vsel %vm84_vm0, %v384_v59, 0 }
 0x487   :  { %397 = vmatpush.bf16.msrb.mxu1 %v389_v61 }
 0x48b   :  { %398 = vmatpush.bf16.msrb.mxu1 %v383_v1 }
 0x48e   :  { %521 = vmatmul.msk.bf16.vlgmr.msrb.gmra.mxu1 %vm77_vm1, %v382_v2  ;;  %vm414_vm1 = vcmask 31744  }
 0x50b   :  { %v400_v6 = vpop.f32.mrf.mxu1 }
 0x50c   :  { %v413_v9 = vpack.c.bf16 %v400_v6, %v400_v6 }
 0x50e   :  { %v419_v11 = vsel %vm84_vm0, %v413_v9, 0 }
 0x50f   :  { %428 = vmatpush.bf16.msrb.mxu0 %v419_v11 }
 0x512   :  { %522 = vmatmul.msk.bf16.vlgmr.msrb.gmra.mxu0 %vm414_vm1, %v412_v12 }
 0x513   :  { %v402_v13 = vpop.f32.mrf.mxu1 }
 0x58f   :  { %v430_v17 = vpop.f32.mrf.mxu0 }
 0x590   :  { %v434_v18 = vpack.c.bf16 %v430_v17, %v430_v17 }
 0x592   :  { %523 = vmatmul.msk.bf16.vlgmr.msrb.gmra.mxu2 %vm137_vm3, %v434_v18 }
 0x597   :  { %v432_v19 = vpop.f32.mrf.mxu0 }
 0x615   :  { %v452_v21 = vpop.f32.mrf.mxu2 }
 0x616   :  { %v453_v22 = vadd.f32 %v533_v20, %v452_v21 }
 0x618   :  { %v456_v23 = vsel %vm144_vm4, %v453_v22, 0.0 }
 0x619   :  { %457 = vadd.xlane.f32.xlu0 %v456_v23 }
 0x61d   :  { %v454_v24 = vpop.f32.mrf.mxu2 }
 0x68c   :  { %v458_v25 = vpop.xlane.xlu0 %457 }
 0x68d   :  { %v459_v26 = vmul.f32 %v458_v25, %v690_v37 }
 0x68f   :  { %v460_v27 = vsub.f32 %v453_v22, %v459_v26 }
 0x691   :  { %v461_v28 = vmul.f32 %v460_v27, %v460_v27 }
 0x693   :  { %v462_v29 = vsel %vm144_vm4, %v461_v28, 0.0 }
 0x694   :  { %463 = vadd.xlane.f32.xlu1 %v462_v29 }
 0x707   :  { %v464_v30 = vpop.xlane.xlu1 %463 }
 0x708   :  { %v465_v31 = vmul.f32 %v464_v30, %v690_v37 }
 0x70a   :  { %v466_v32 = vadd.f32 1e-05, %v465_v31 }
 0x70c   :  { %552 = vrsqrt.f32 %v466_v32  ;;  %vm473_vm3 = vweird.f32 %v466_v32 }
 0x712   :  { %v553_v34 = vpop.eup %552 }
 0x713   :  { %v468_v35 = vmul.f32 %v553_v34, %v466_v32  ;;  %vm474_vm0 = vweird.f32 %v553_v34 }
 0x714   :  { %vm475_vm6 = vmor %vm473_vm3, %vm474_vm0 }
 0x715   :  { %v469_v36 = vmul.f32 %v553_v34, %v468_v35 }
 0x717   :  { %v470_v38 = vmul.f32 0.5, %v469_v36 }
 0x719   :  { %v471_v39 = vsub.f32 1.5, %v470_v38 }
 0x71b   :  { %v472_v40 = vmul.f32 %v553_v34, %v471_v39 }
 0x71d   :  { %v476_v37 = vsel %vm475_vm6, %v553_v34, %v472_v40 }
 0x71e   :  { %v477_v42 = vmul.f32 %v476_v37, %v460_v27 }
 0x720   :  { %v481_v44 = vmul.f32 %v534_v41, %v477_v42 }
 0x722   :  { %v485_v45 = vadd.f32 %v535_v43, %v481_v44 }
 0x724   :  { %vm486_vm7 = vcmp.gt.f32.partialorder %v485_v45, 0.0  ;;  %v487_v8 = vmul.f32 0.01, %v485_v45 }
 0x726   :  { %v488_v10 = vsel %vm486_vm7, %v485_v45, %v487_v8 }
 0x727   :  { %v489_v47 = vadd.f32 %v488_v10, %v400_v6 }
 0x729   :  { %v494_v48 = vmul.f32 %v536_v46, %v489_v47 }
 0x72b   :  { %v495_v49 = vsel %vm144_vm4, %v494_v48, 0.0 }
 0x72c   :  { %496 = vadd.xlane.f32.xlu2 %v495_v49 }
 0x79f   :  { %v497_v52 = vpop.xlane.xlu2 %496 }
 0x7a0   :  { %v502_v53 = vadd.f32 %v537_v51, %v497_v52 }
 0x7a2   :  { %505 = vperm.xlu0 %526, %v502_v53  }
 0x814   :  { %v506_v54 = vpop.permute.xlu0 %505 }
 0x815   :  { %508 = vst [vmem:[%s815_s18] sm:$0xf] %v506_v54 }

</bundles_post_ra>
